<compile_context>
chip_gen: v6e
topology: v6e:2x2x1
jax: 0.10.0
libtpu: 0.0.40
codegen_flags: <defaults>
</compile_context>

<pallas_src>
import jax
import jax.numpy as jnp
from jax.experimental import pallas as pl
from jax.experimental.pallas import tpu as pltpu


# -----------------------------------------------------------------------------
# Primary path: zero-copy identity via input/output aliasing.
# -----------------------------------------------------------------------------
def _alias_identity_kernel(x_ref, o_ref):
    # o_ref aliases x_ref's HBM buffer (input_output_aliases={0: 0}), so the
    # output value is already fully defined: no DMA, no VMEM round-trip, no
    # HBM traffic, nothing to compute.
    del x_ref, o_ref


def mynet_forward(x, xlen):
    """MyNet.forward: identity (xlen unused). Output aliases the input buffer.

    Perf contract: for this to be truly zero-copy the input must be donated at
    the jit boundary (see `mynet_forward_donated`); otherwise XLA inserts a
    defensive copy of x before the pallas_call (correct, but ~2x size/BW HBM
    traffic for large tensors).
    """
    del xlen  # reference forward ignores xlen
    return pl.pallas_call(
        _alias_identity_kernel,
        out_shape=jax.ShapeDtypeStruct(x.shape, x.dtype),
        in_specs=[pl.BlockSpec(memory_space=pl.ANY)],
        out_specs=pl.BlockSpec(memory_space=pl.ANY),
        input_output_aliases={0: 0},
    )(x)


# Recommended production entry point: donating x makes the aliasing genuinely
# zero-copy (only custom-call launch overhead remains). The caller must not
# reuse the donated x handle afterwards.
mynet_forward_donated = jax.jit(mynet_forward, donate_argnums=0)


# -----------------------------------------------------------------------------
# Secondary path: materialized copy, only if a genuinely fresh output buffer is
# required. A memcpy is purely DMA/HBM-bound, so a single HBM->HBM DMA beats
# any VMEM-tiled grid copy: zero per-grid-step overhead, zero VMEM usage, and
# no tile-shape constraints for awkward shapes/dtypes.
# -----------------------------------------------------------------------------
def _dma_copy_kernel(x_ref, o_ref, sem):
    cp = pltpu.make_async_copy(x_ref, o_ref, sem)
    cp.start()
    cp.wait()


def mynet_forward_materialized(x, xlen):
    """Identity forward that materializes a fresh output buffer (one HBM->HBM DMA)."""
    del xlen
    return pl.pallas_call(
        _dma_copy_kernel,
        out_shape=jax.ShapeDtypeStruct(x.shape, x.dtype),
        in_specs=[pl.BlockSpec(memory_space=pl.ANY)],
        out_specs=pl.BlockSpec(memory_space=pl.ANY),
        scratch_shapes=[pltpu.SemaphoreType.DMA(())],
    )(x)


if __name__ == "__main__":
    # MyNet.__init__(num_classes, vocab_size, hidden_size, embed_size) allocates
    # no parameters, so there is nothing to initialize.
    num_classes, vocab_size, hidden_size, embed_size = 4, 100, 32, 32

    key = jax.random.PRNGKey(0)
    kx, kl = jax.random.split(key)
    batch, seq = 2, 8
    x = jax.random.normal(kx, (batch, seq, embed_size), dtype=jnp.float32)
    xlen = jax.random.randint(kl, (batch,), 1, seq + 1, dtype=jnp.int32)

    # 1) Primary aliased path (non-donated: safe to reuse x afterwards).
    out = jax.block_until_ready(mynet_forward(x, xlen))
    assert out.shape == x.shape and out.dtype == x.dtype
    assert jnp.array_equal(out, x)

    # 2) Donated variant (true zero-copy). Use a throwaway copy of x because
    #    donation invalidates the argument buffer handle.
    x_donate = x + 0.0  # fresh buffer, identical values
    out_d = jax.block_until_ready(mynet_forward_donated(x_donate, xlen))
    assert out_d.shape == x.shape and out_d.dtype == x.dtype
    assert jnp.array_equal(out_d, x)

    # 3) Materialized copy path (single HBM->HBM DMA).
    out_m = jax.block_until_ready(mynet_forward_materialized(x, xlen))
    assert out_m.shape == x.shape and out_m.dtype == x.dtype
    assert jnp.array_equal(out_m, x)

    print("KERNEL_OK")
</pallas_src>

<mosaic_0001>
module attributes {stable_mosaic.version = 11 : i64} {
  func.func @_alias_identity_kernel(%arg0: memref<2x8x32xf32, #tpu.memory_space<any>>, %arg1: memref<2x8x32xf32, #tpu.memory_space<any>>) attributes {dimension_semantics = [], scalar_prefetch = 0 : i64, scratch_operands = 0 : i64, tpu.core_type = #tpu.core_type<tc>} {
    return
  }
}

</mosaic_0001>

<bundles_post_ra>
// kernel: tpu_custom_call.1
= control target key start
LH: loop header
LB: loop body
LE: loop exit
PB: predicated region body
PF: predicated region fallthrough
CT: control target
= control target key end

     0   :  { %s16_s0 = inlined_call_operand.hbm [shape: f32[2,8,32], index: 0, kind: input, shape index: {}, may-alias: {0,1}]   ;;  %s17_s1 = inlined_call_operand.hbm [shape: f32[2,8,32], index: 1, kind: output, shape index: {}, may-alias: {0,1}]  }

</bundles_post_ra>
